<compile_context>
chip_gen: v6e
topology: v6e:2x2x1
jax: 0.10.0
libtpu: 0.0.40
codegen_flags: <defaults>
</compile_context>

<pallas_src>
import functools

import jax
import jax.numpy as jnp
from jax.experimental import pallas as pl
from jax.experimental.pallas import tpu as pltpu


def _head_kernel(write_logits, h_ref, w_ref, *refs):
    """One (row-tile, vocab-tile) grid step: matmul + running argmax.

    h_ref:  (TR, H)  bf16   hidden-state row tile
    w_ref:  (H, TV)  bf16   vocab-projection column tile
    refs:   [logits_ref (TR, TV) f32]  (only if write_logits),
            patch_ref (TR, 1) i32, max_sc (TR, 1) f32, idx_sc (TR, 1) i32
    """
    if write_logits:
        logits_ref, patch_ref, max_sc, idx_sc = refs
    else:
        patch_ref, max_sc, idx_sc = refs

    j = pl.program_id(1)
    tv = w_ref.shape[-1]

    # bf16 MXU matmul with f32 accumulation.
    logits = jnp.dot(h_ref[...], w_ref[...], preferred_element_type=jnp.float32)
    if write_logits:
        logits_ref[...] = logits

    @pl.when(j == 0)
    def _():
        max_sc[...] = jnp.full_like(max_sc, -jnp.inf)
        idx_sc[...] = jnp.zeros_like(idx_sc)

    # First-occurrence argmax inside this vocab tile (XLU reduce + VPU select).
    tile_max = jnp.max(logits, axis=-1, keepdims=True)
    iota = jax.lax.broadcasted_iota(jnp.int32, logits.shape, 1)
    local_idx = jnp.min(jnp.where(logits == tile_max, iota, tv),
                        axis=-1, keepdims=True)
    global_idx = (local_idx + j * tv).astype(jnp.int32)

    # Strictly-greater update keeps first-occurrence semantics across tiles.
    better = tile_max > max_sc[...]
    idx_sc[...] = jnp.where(better, global_idx, idx_sc[...])
    max_sc[...] = jnp.maximum(max_sc[...], tile_max)

    @pl.when(j == pl.num_programs(1) - 1)
    def _():
        patch_ref[...] = idx_sc[...]


def _pick_tile(dim, candidates):
    for c in candidates:
        if dim % c == 0:
            return c
    return dim


def _run_head(hidden, w, *, write_logits, tr=None, tv=None):
    """hidden: (R, H) bf16, w: (H, V) bf16 -> (logits f32 if requested, argmax i32)."""
    R, H = hidden.shape
    V = w.shape[1]
    # Row tiles: multiples of 16 preferred (bf16 sublane packing); vocab tiles:
    # multiples of 128 (lane-dense output stores).
    tr = tr if tr is not None else _pick_tile(R, (256, 128, 64, 32, 16))
    tv = tv if tv is not None else _pick_tile(V, (2048, 1024, 512, 256, 128))
    assert R % tr == 0 and V % tv == 0

    patch_spec = pl.BlockSpec((tr, 1), lambda i, j: (i, 0))
    if write_logits:
        out_shape = (jax.ShapeDtypeStruct((R, V), jnp.float32),
                     jax.ShapeDtypeStruct((R, 1), jnp.int32))
        out_specs = (pl.BlockSpec((tr, tv), lambda i, j: (i, j)), patch_spec)
    else:
        # preds pass: never materialize / DMA back the discarded logits tensor.
        out_shape = jax.ShapeDtypeStruct((R, 1), jnp.int32)
        out_specs = patch_spec

    return pl.pallas_call(
        functools.partial(_head_kernel, write_logits),
        out_shape=out_shape,
        grid_spec=pltpu.PrefetchScalarGridSpec(
            num_scalar_prefetch=0,
            grid=(R // tr, V // tv),
            in_specs=[
                pl.BlockSpec((tr, H), lambda i, j: (i, 0)),
                pl.BlockSpec((H, tv), lambda i, j: (0, j)),
            ],
            out_specs=out_specs,
            scratch_shapes=[
                pltpu.VMEM((tr, 1), jnp.float32),   # running max
                pltpu.VMEM((tr, 1), jnp.int32),     # running argmax
            ],
        ),
        compiler_params=pltpu.CompilerParams(
            # Row tiles shard across TensorCores (v7x megacore); the vocab axis
            # carries the running-argmax reduction so it stays last/sequential.
            dimension_semantics=("parallel", "arbitrary"),
            vmem_limit_bytes=32 * 1024 * 1024,
        ),
    )(hidden, w)


def reinforce_forward(source_ids, source_mask, target_ids, target_mask,
                      embed_table, w_out, *, tr=None, tv=None):
    """Mirrors REINFORCE.forward: returns (logits, patch_out, preds)."""
    del source_mask  # greedy single-pass stand-in does not need it
    B, Tt = target_ids.shape
    _, Ts = source_ids.shape
    V = w_out.shape[1]
    H = embed_table.shape[1]

    # bf16 MXU inputs; f32 accumulation happens inside the kernel.
    w_bf16 = w_out.astype(jnp.bfloat16)

    # ---- generator logits on the target side (trainable path) ----
    h_tgt = embed_table[target_ids].reshape(B * Tt, H).astype(jnp.bfloat16)
    logits_flat, patch_flat = _run_head(h_tgt, w_bf16, write_logits=True,
                                        tr=tr, tv=tv)
    logits = logits_flat.reshape(B, Tt, V)
    # argmax(masked log_softmax) == argmax(logits) on kept rows, 0 on fully
    # masked rows (all -inf); the row-wise mask is applied here, outside the kernel.
    keep = target_mask.astype(bool)
    patch_out = jnp.where(keep, patch_flat.reshape(B, Tt), 0).astype(jnp.int32)

    # ---- preds: no_grad greedy pass on the source side (no logits output) ----
    h_src = embed_table[source_ids].reshape(B * Ts, H).astype(jnp.bfloat16)
    preds_flat = _run_head(jax.lax.stop_gradient(h_src), w_bf16,
                           write_logits=False, tr=tr, tv=tv)
    preds = preds_flat.reshape(B, Ts)

    return logits, patch_out, preds


if __name__ == "__main__":
    # Small synthetic shapes: batch=2, seq=16, hidden=64, vocab=512.
    B, T, H, V = 2, 16, 64, 512
    TR, TV = 16, 256   # grid (2, 2): both the row and vocab axes are exercised

    key = jax.random.PRNGKey(0)
    k_emb, k_w, k_src, k_tgt, k_mask = jax.random.split(key, 5)

    # Deterministic synthetic "generator" parameters.
    embed_table = jax.random.normal(k_emb, (V, H), jnp.float32) * 0.02
    w_out = jax.random.normal(k_w, (H, V), jnp.float32) * 0.02

    # Deterministic example inputs (token ids + masks).
    source_ids = jax.random.randint(k_src, (B, T), 0, V, jnp.int32)
    target_ids = jax.random.randint(k_tgt, (B, T), 0, V, jnp.int32)
    source_mask = jnp.ones((B, T), jnp.int32)
    target_mask = jax.random.uniform(k_mask, (B, T)) > 0.2   # a few padded rows

    fwd = jax.jit(functools.partial(reinforce_forward, tr=TR, tv=TV))
    logits, patch_out, preds = fwd(source_ids, source_mask, target_ids,
                                   target_mask, embed_table, w_out)
    jax.block_until_ready((logits, patch_out, preds))

    assert logits.shape == (B, T, V) and logits.dtype == jnp.float32
    assert patch_out.shape == (B, T) and patch_out.dtype == jnp.int32
    assert preds.shape == (B, T) and preds.dtype == jnp.int32

    # Pure-JAX reference of the same math (bf16 inputs, f32 accumulation).
    w_bf16 = w_out.astype(jnp.bfloat16)
    h_tgt = embed_table[target_ids].reshape(B * T, H).astype(jnp.bfloat16)
    logits_ref = jnp.dot(h_tgt, w_bf16,
                         preferred_element_type=jnp.float32).reshape(B, T, V)
    lsm_ref = jax.nn.log_softmax(logits_ref, axis=-1)
    masked_ref = jnp.where(target_mask[..., None], lsm_ref, -jnp.inf)
    patch_ref = jnp.argmax(masked_ref, axis=-1).astype(jnp.int32)

    h_src = embed_table[source_ids].reshape(B * T, H).astype(jnp.bfloat16)
    preds_ref = jnp.argmax(
        jnp.dot(h_src, w_bf16, preferred_element_type=jnp.float32),
        axis=-1).reshape(B, T).astype(jnp.int32)

    assert jnp.allclose(logits, logits_ref, atol=1e-4, rtol=1e-3)
    assert jnp.array_equal(patch_out, patch_ref)
    assert jnp.array_equal(preds, preds_ref)

    print("KERNEL_OK")
</pallas_src>

<mosaic_0001>
module attributes {stable_mosaic.version = 11 : i64} {
  func.func @_head_kernel(%arg0: i32, %arg1: i32, %arg2: memref<16x64xbf16, #tpu.memory_space<vmem>>, %arg3: memref<64x256xbf16, #tpu.memory_space<vmem>>, %arg4: memref<16x1xi32, #tpu.memory_space<vmem>>, %arg5: memref<16x1xf32, #tpu.memory_space<vmem>>, %arg6: memref<16x1xi32, #tpu.memory_space<vmem>>) attributes {dimension_semantics = [#tpu.dimension_semantics<parallel>, #tpu.dimension_semantics<arbitrary>], iteration_bounds = array<i64: 2, 2>, scalar_prefetch = 0 : i64, scratch_operands = 2 : i64, tpu.core_type = #tpu.core_type<tc>, window_params = [{transform_indices = @transform_0, window_bounds = array<i64: 16, 64>}, {transform_indices = @transform_1, window_bounds = array<i64: 64, 256>}, {transform_indices = @transform_2, window_bounds = array<i64: 16, 1>}]} {
    %c0 = arith.constant 0 : index
    %c0_0 = arith.constant 0 : index
    %0 = vector.load %arg2[%c0, %c0_0] : memref<16x64xbf16, #tpu.memory_space<vmem>>, vector<16x64xbf16>
    %c0_1 = arith.constant 0 : index
    %c0_2 = arith.constant 0 : index
    %1 = vector.load %arg3[%c0_1, %c0_2] : memref<64x256xbf16, #tpu.memory_space<vmem>>, vector<64x256xbf16>
    %cst = arith.constant dense<0.000000e+00> : vector<16x256xf32>
    %2 = tpu.matmul %0, %1, %cst {dimension_numbers = #tpu.dot_dimension_numbers<[1], [0], [0], [1], [0, 0, 1, 1], [], []>} : vector<16x64xbf16>, vector<64x256xbf16>, vector<16x256xf32> -> vector<16x256xf32>
    %c0_i32 = arith.constant 0 : i32
    %3 = arith.cmpi eq, %arg1, %c0_i32 : i32
    %4 = arith.extui %3 : i1 to i32
    %c0_i32_3 = arith.constant 0 : i32
    %5 = arith.cmpi ne, %4, %c0_i32_3 : i32
    scf.if %5 {
      %cst_18 = arith.constant 0xFF800000 : f32
      %29 = vector.broadcast %cst_18 : f32 to vector<16x1xf32>
      %c0_19 = arith.constant 0 : index
      %c0_20 = arith.constant 0 : index
      %30 = vector.load %arg5[%c0_19, %c0_20] : memref<16x1xf32, #tpu.memory_space<vmem>>, vector<16x1xf32>
      tpu.vector_store %arg5[%c0_19, %c0_20], %29 {strides = array<i32>} : memref<16x1xf32, #tpu.memory_space<vmem>>, vector<16x1xf32>,
      %c0_i32_21 = arith.constant 0 : i32
      %31 = vector.broadcast %c0_i32_21 : i32 to vector<16x1xi32>
      %c0_22 = arith.constant 0 : index
      %c0_23 = arith.constant 0 : index
      %32 = vector.load %arg6[%c0_22, %c0_23] : memref<16x1xi32, #tpu.memory_space<vmem>>, vector<16x1xi32>
      tpu.vector_store %arg6[%c0_22, %c0_23], %31 {strides = array<i32>} : memref<16x1xi32, #tpu.memory_space<vmem>>, vector<16x1xi32>,
    } else {
    }
    %cst_4 = arith.constant dense<0xFF800000> : vector<16xf32>
    %6 = vector.multi_reduction <maximumf>, %2, %cst_4 [1] : vector<16x256xf32> to vector<16xf32>
    %7 = vector.shape_cast %6 : vector<16xf32> to vector<16x1xf32>
    %8 = tpu.iota {dimensions = array<i32: 1>} : vector<16x256xi32>
    %9 = vector.broadcast %7 : vector<16x1xf32> to vector<16x256xf32>
    %10 = arith.cmpf oeq, %2, %9 : vector<16x256xf32>
    %c256_i32 = arith.constant 256 : i32
    %11 = vector.broadcast %c256_i32 : i32 to vector<16x256xi32>
    %12 = arith.select %10, %8, %11 : vector<16x256xi1>, vector<16x256xi32>
    %cst_5 = arith.constant dense<2147483647> : vector<16xi32>
    %13 = vector.multi_reduction <minsi>, %12, %cst_5 [1] : vector<16x256xi32> to vector<16xi32>
    %14 = vector.shape_cast %13 : vector<16xi32> to vector<16x1xi32>
    %c256_i32_6 = arith.constant 256 : i32
    %15 = arith.muli %arg1, %c256_i32_6 : i32
    %16 = vector.broadcast %15 : i32 to vector<16x1xi32>
    %17 = arith.addi %14, %16 : vector<16x1xi32>
    %c0_7 = arith.constant 0 : index
    %c0_8 = arith.constant 0 : index
    %18 = vector.load %arg5[%c0_7, %c0_8] : memref<16x1xf32, #tpu.memory_space<vmem>>, vector<16x1xf32>
    %19 = arith.cmpf ogt, %7, %18 : vector<16x1xf32>
    %c0_9 = arith.constant 0 : index
    %c0_10 = arith.constant 0 : index
    %20 = vector.load %arg6[%c0_9, %c0_10] : memref<16x1xi32, #tpu.memory_space<vmem>>, vector<16x1xi32>
    %21 = arith.select %19, %17, %20 : vector<16x1xi1>, vector<16x1xi32>
    %c0_11 = arith.constant 0 : index
    %c0_12 = arith.constant 0 : index
    %22 = vector.load %arg6[%c0_11, %c0_12] : memref<16x1xi32, #tpu.memory_space<vmem>>, vector<16x1xi32>
    tpu.vector_store %arg6[%c0_11, %c0_12], %21 {strides = array<i32>} : memref<16x1xi32, #tpu.memory_space<vmem>>, vector<16x1xi32>,
    %c0_13 = arith.constant 0 : index
    %c0_14 = arith.constant 0 : index
    %23 = vector.load %arg5[%c0_13, %c0_14] : memref<16x1xf32, #tpu.memory_space<vmem>>, vector<16x1xf32>
    %24 = arith.maximumf %23, %7 : vector<16x1xf32>
    %c0_15 = arith.constant 0 : index
    %c0_16 = arith.constant 0 : index
    %25 = vector.load %arg5[%c0_15, %c0_16] : memref<16x1xf32, #tpu.memory_space<vmem>>, vector<16x1xf32>
    tpu.vector_store %arg5[%c0_15, %c0_16], %24 {strides = array<i32>} : memref<16x1xf32, #tpu.memory_space<vmem>>, vector<16x1xf32>,
    %c1_i32 = arith.constant 1 : i32
    %26 = arith.cmpi eq, %arg1, %c1_i32 : i32
    %27 = arith.extui %26 : i1 to i32
    %c0_i32_17 = arith.constant 0 : i32
    %28 = arith.cmpi ne, %27, %c0_i32_17 : i32
    scf.if %28 {
      %c0_18 = arith.constant 0 : index
      %c0_19 = arith.constant 0 : index
      %29 = vector.load %arg6[%c0_18, %c0_19] : memref<16x1xi32, #tpu.memory_space<vmem>>, vector<16x1xi32>
      %c0_20 = arith.constant 0 : index
      %c0_21 = arith.constant 0 : index
      %30 = vector.load %arg4[%c0_20, %c0_21] : memref<16x1xi32, #tpu.memory_space<vmem>>, vector<16x1xi32>
      tpu.vector_store %arg4[%c0_20, %c0_21], %29 {strides = array<i32>} : memref<16x1xi32, #tpu.memory_space<vmem>>, vector<16x1xi32>,
    } else {
    }
    return
  }
  func.func @transform_0(%arg0: i32, %arg1: i32) -> (i32, i32) {
    %c0_i32 = arith.constant 0 : i32
    %c0_i32_0 = arith.constant 0 : i32
    return %arg0, %c0_i32 : i32, i32
  }
  func.func @transform_1(%arg0: i32, %arg1: i32) -> (i32, i32) {
    %c0_i32 = arith.constant 0 : i32
    %c0_i32_0 = arith.constant 0 : i32
    return %c0_i32, %arg1 : i32, i32
  }
  func.func @transform_2(%arg0: i32, %arg1: i32) -> (i32, i32) {
    %c0_i32 = arith.constant 0 : i32
    %c0_i32_0 = arith.constant 0 : i32
    return %arg0, %c0_i32 : i32, i32
  }
}

module attributes {stable_mosaic.version = 11 : i64} {
  func.func @_head_kernel(%arg0: i32, %arg1: i32, %arg2: memref<16x64xbf16, #tpu.memory_space<vmem>>, %arg3: memref<64x256xbf16, #tpu.memory_space<vmem>>, %arg4: memref<16x256xf32, #tpu.memory_space<vmem>>, %arg5: memref<16x1xi32, #tpu.memory_space<vmem>>, %arg6: memref<16x1xf32, #tpu.memory_space<vmem>>, %arg7: memref<16x1xi32, #tpu.memory_space<vmem>>) attributes {dimension_semantics = [#tpu.dimension_semantics<parallel>, #tpu.dimension_semantics<arbitrary>], iteration_bounds = array<i64: 2, 2>, scalar_prefetch = 0 : i64, scratch_operands = 2 : i64, tpu.core_type = #tpu.core_type<tc>, window_params = [{transform_indices = @transform_0, window_bounds = array<i64: 16, 64>}, {transform_indices = @transform_1, window_bounds = array<i64: 64, 256>}, {transform_indices = @transform_2, window_bounds = array<i64: 16, 256>}, {transform_indices = @transform_3, window_bounds = array<i64: 16, 1>}]} {
    %c0 = arith.constant 0 : index
    %c0_0 = arith.constant 0 : index
    %0 = vector.load %arg2[%c0, %c0_0] : memref<16x64xbf16, #tpu.memory_space<vmem>>, vector<16x64xbf16>
    %c0_1 = arith.constant 0 : index
    %c0_2 = arith.constant 0 : index
    %1 = vector.load %arg3[%c0_1, %c0_2] : memref<64x256xbf16, #tpu.memory_space<vmem>>, vector<64x256xbf16>
    %cst = arith.constant dense<0.000000e+00> : vector<16x256xf32>
    %2 = tpu.matmul %0, %1, %cst {dimension_numbers = #tpu.dot_dimension_numbers<[1], [0], [0], [1], [0, 0, 1, 1], [], []>} : vector<16x64xbf16>, vector<64x256xbf16>, vector<16x256xf32> -> vector<16x256xf32>
    %c0_3 = arith.constant 0 : index
    %c0_4 = arith.constant 0 : index
    %3 = vector.load %arg4[%c0_3, %c0_4] : memref<16x256xf32, #tpu.memory_space<vmem>>, vector<16x256xf32>
    tpu.vector_store %arg4[%c0_3, %c0_4], %2 {strides = array<i32>} : memref<16x256xf32, #tpu.memory_space<vmem>>, vector<16x256xf32>,
    %c0_i32 = arith.constant 0 : i32
    %4 = arith.cmpi eq, %arg1, %c0_i32 : i32
    %5 = arith.extui %4 : i1 to i32
    %c0_i32_5 = arith.constant 0 : i32
    %6 = arith.cmpi ne, %5, %c0_i32_5 : i32
    scf.if %6 {
      %cst_20 = arith.constant 0xFF800000 : f32
      %30 = vector.broadcast %cst_20 : f32 to vector<16x1xf32>
      %c0_21 = arith.constant 0 : index
      %c0_22 = arith.constant 0 : index
      %31 = vector.load %arg6[%c0_21, %c0_22] : memref<16x1xf32, #tpu.memory_space<vmem>>, vector<16x1xf32>
      tpu.vector_store %arg6[%c0_21, %c0_22], %30 {strides = array<i32>} : memref<16x1xf32, #tpu.memory_space<vmem>>, vector<16x1xf32>,
      %c0_i32_23 = arith.constant 0 : i32
      %32 = vector.broadcast %c0_i32_23 : i32 to vector<16x1xi32>
      %c0_24 = arith.constant 0 : index
      %c0_25 = arith.constant 0 : index
      %33 = vector.load %arg7[%c0_24, %c0_25] : memref<16x1xi32, #tpu.memory_space<vmem>>, vector<16x1xi32>
      tpu.vector_store %arg7[%c0_24, %c0_25], %32 {strides = array<i32>} : memref<16x1xi32, #tpu.memory_space<vmem>>, vector<16x1xi32>,
    } else {
    }
    %cst_6 = arith.constant dense<0xFF800000> : vector<16xf32>
    %7 = vector.multi_reduction <maximumf>, %2, %cst_6 [1] : vector<16x256xf32> to vector<16xf32>
    %8 = vector.shape_cast %7 : vector<16xf32> to vector<16x1xf32>
    %9 = tpu.iota {dimensions = array<i32: 1>} : vector<16x256xi32>
    %10 = vector.broadcast %8 : vector<16x1xf32> to vector<16x256xf32>
    %11 = arith.cmpf oeq, %2, %10 : vector<16x256xf32>
    %c256_i32 = arith.constant 256 : i32
    %12 = vector.broadcast %c256_i32 : i32 to vector<16x256xi32>
    %13 = arith.select %11, %9, %12 : vector<16x256xi1>, vector<16x256xi32>
    %cst_7 = arith.constant dense<2147483647> : vector<16xi32>
    %14 = vector.multi_reduction <minsi>, %13, %cst_7 [1] : vector<16x256xi32> to vector<16xi32>
    %15 = vector.shape_cast %14 : vector<16xi32> to vector<16x1xi32>
    %c256_i32_8 = arith.constant 256 : i32
    %16 = arith.muli %arg1, %c256_i32_8 : i32
    %17 = vector.broadcast %16 : i32 to vector<16x1xi32>
    %18 = arith.addi %15, %17 : vector<16x1xi32>
    %c0_9 = arith.constant 0 : index
    %c0_10 = arith.constant 0 : index
    %19 = vector.load %arg6[%c0_9, %c0_10] : memref<16x1xf32, #tpu.memory_space<vmem>>, vector<16x1xf32>
    %20 = arith.cmpf ogt, %8, %19 : vector<16x1xf32>
    %c0_11 = arith.constant 0 : index
    %c0_12 = arith.constant 0 : index
    %21 = vector.load %arg7[%c0_11, %c0_12] : memref<16x1xi32, #tpu.memory_space<vmem>>, vector<16x1xi32>
    %22 = arith.select %20, %18, %21 : vector<16x1xi1>, vector<16x1xi32>
    %c0_13 = arith.constant 0 : index
    %c0_14 = arith.constant 0 : index
    %23 = vector.load %arg7[%c0_13, %c0_14] : memref<16x1xi32, #tpu.memory_space<vmem>>, vector<16x1xi32>
    tpu.vector_store %arg7[%c0_13, %c0_14], %22 {strides = array<i32>} : memref<16x1xi32, #tpu.memory_space<vmem>>, vector<16x1xi32>,
    %c0_15 = arith.constant 0 : index
    %c0_16 = arith.constant 0 : index
    %24 = vector.load %arg6[%c0_15, %c0_16] : memref<16x1xf32, #tpu.memory_space<vmem>>, vector<16x1xf32>
    %25 = arith.maximumf %24, %8 : vector<16x1xf32>
    %c0_17 = arith.constant 0 : index
    %c0_18 = arith.constant 0 : index
    %26 = vector.load %arg6[%c0_17, %c0_18] : memref<16x1xf32, #tpu.memory_space<vmem>>, vector<16x1xf32>
    tpu.vector_store %arg6[%c0_17, %c0_18], %25 {strides = array<i32>} : memref<16x1xf32, #tpu.memory_space<vmem>>, vector<16x1xf32>,
    %c1_i32 = arith.constant 1 : i32
    %27 = arith.cmpi eq, %arg1, %c1_i32 : i32
    %28 = arith.extui %27 : i1 to i32
    %c0_i32_19 = arith.constant 0 : i32
    %29 = arith.cmpi ne, %28, %c0_i32_19 : i32
    scf.if %29 {
      %c0_20 = arith.constant 0 : index
      %c0_21 = arith.constant 0 : index
      %30 = vector.load %arg7[%c0_20, %c0_21] : memref<16x1xi32, #tpu.memory_space<vmem>>, vector<16x1xi32>
      %c0_22 = arith.constant 0 : index
      %c0_23 = arith.constant 0 : index
      %31 = vector.load %arg5[%c0_22, %c0_23] : memref<16x1xi32, #tpu.memory_space<vmem>>, vector<16x1xi32>
      tpu.vector_store %arg5[%c0_22, %c0_23], %30 {strides = array<i32>} : memref<16x1xi32, #tpu.memory_space<vmem>>, vector<16x1xi32>,
    } else {
    }
    return
  }
  func.func @transform_0(%arg0: i32, %arg1: i32) -> (i32, i32) {
    %c0_i32 = arith.constant 0 : i32
    %c0_i32_0 = arith.constant 0 : i32
    return %arg0, %c0_i32 : i32, i32
  }
  func.func @transform_1(%arg0: i32, %arg1: i32) -> (i32, i32) {
    %c0_i32 = arith.constant 0 : i32
    %c0_i32_0 = arith.constant 0 : i32
    return %c0_i32, %arg1 : i32, i32
  }
  func.func @transform_2(%arg0: i32, %arg1: i32) -> (i32, i32) {
    %c0_i32 = arith.constant 0 : i32
    return %arg0, %arg1 : i32, i32
  }
  func.func @transform_3(%arg0: i32, %arg1: i32) -> (i32, i32) {
    %c0_i32 = arith.constant 0 : i32
    %c0_i32_0 = arith.constant 0 : i32
    return %arg0, %c0_i32 : i32, i32
  }
}

</mosaic_0001>

<bundles_post_ra>
// kernel: reinforce_forward.2
= control target key start
LH: loop header
LB: loop body
LE: loop exit
PB: predicated region body
PF: predicated region fallthrough
CT: control target
= control target key end

     0   :  { %9 = vsyncpa [#allocation6], 0  ;;  %s1104_s0 = inlined_call_operand.vmem [shape: bf16[32,64], index: 0, kind: input, shape index: {}]   ;;  %s1105_s1 = inlined_call_operand.vmem [shape: bf16[64,512], index: 1, kind: input, shape index: {}]   ;;  %s1106_s2 = inlined_call_operand.hbm [shape: f32[32,512], index: 2, kind: output, shape index: {0}]   ;;  %s1107_s3 = inlined_call_operand.vmem [shape: s32[32,1], index: 3, kind: output, shape index: {1}]  }
   0x1   :  { %11 = vsyncpa [#allocation6 + $0x1], 0  ;;  %s904_s12 = smov 0   ;;  %s906_s13 = smov 0  }
   0x2   :  { %s908_s14 = smov 0   ;;  %s910_s15 = smov 0  }
   0x3   :  { %s912_s16 = smov 0   ;;  %s914_s17 = smov 0  }
   0x4   :  { %s916_s18 = smov 0   ;;  %s918_s19 = smov 0  }
   0x5   :  { %s920_s20 = smov 0   ;;  %s922_s21 = smov 0  }
   0x6 LB: > { %s625_s22 = sadd.s32 4294967295, %s875_s21   ;;  %s626_s23 = sadd.s32 4294967294, %s875_s21   ;;  %s875_s21 = sphi %s922_s21, %s17_s21   ;;  %s871_s20 = sphi %s920_s20, %s1119_s20   ;;  %s867_s19 = sphi %s918_s19, %s1118_s19   ;;  %s863_s18 = sphi %s916_s18, %s1117_s18   ;;  %s859_s17 = sphi %s914_s17, %s1116_s17   ;;  %s855_s16 = sphi %s912_s16, %s1115_s16   ;;  %s851_s15 = sphi %s910_s15, %s1114_s15   ;;  %s847_s14 = sphi %s908_s14, %s1113_s14   ;;  %s843_s13 = sphi %s906_s13, %s1112_s13   ;;  %s839_s12 = sphi %s904_s12, %s1111_s12  }
   0x7   : > { %s26_s24 = sadd.s32 1, %s867_s19  ;;  %s29_s25 = sadd.s32 1, %s871_s20 }
   0x8   : > { %p27_p0 = scmp.ge.s32.totalorder %s26_s24, 2  ;;  %s62_s26 = sadd.s32 1, %s855_s16 }
   0x9   : > { %p69_p1 = scmp.ne.s32.totalorder %s855_s16, %s851_s15  ;;  %p70_p2 = scmp.eq.s32.totalorder %s875_s21, 0 }
   0xa   : > { %s1121_s24 = smov (%p27_p0, %s26_s24), 0  ;;  %s1123_s25 = smov (!%p27_p0, %s29_s25), %s871_s20 }
   0xb   : > { %s59_s27 = ssub.s32 %s867_s19, %s1121_s24  ;;  %p967_p3 = por %p70_p2, %p69_p1 }
   0xc   : > { %p31_p4 = scmp.ge.s32.totalorder %s1123_s25, 2  ;;  %p60_p5 = scmp.eq.s32.totalorder %s59_s27, 0 }
   0xd   : > { %s90_s29 = sadd.s32 1, %s847_s14  ;;  %p100_p6 = scmp.ne.s32.totalorder %s847_s14, %s843_s13 }
   0xe   : > { %s1125_s25 = smov (%p31_p4, %s1123_s25), 0  ;;  %p101_p7 = scmp.eq.s32.totalorder %s625_s22, 3 }
   0xf   : > { %s977_s30 = scalar_select %p60_p5, %s855_s16, %s62_s26  }
  0x10   : > { %s85_s4 = ssub.s32 %s871_s20, %s1125_s25  ;;  %p106_p8 = scmp.ne.s32.totalorder %s843_s13, %s839_s12 }
  0x11   : > { %s87_s5 = sor.u32 %s85_s4, %s59_s27  ;;  %p983_p10 = por %p101_p7, %p100_p6 }
  0x12   : > { %p88_p9 = scmp.eq.s32.totalorder %s87_s5, 0  ;;  %p107_p11 = scmp.eq.s32.totalorder %s626_s23, 3 }
  0x13   : > { %p628_p13 = scmp.ge.s32.totalorder %s875_s21, 4 }
  0x14   : > { %s988_s7 = scalar_select %p88_p9, %s847_s14, %s90_s29  }
  0x15   : > { %p990_p12 = por %p107_p11, %p106_p8  ;;  %149 = sbr.rel (%p628_p13) target bundleno = 34 (0x22), region = 16 }
  0x1a   : > { %161 = sbr.rel (!%p967_p3) target bundleno = 34 (0x22), region = 24  ;;  %s163_s9 = sand.u32 (%p967_p3), 1, %s855_s16  }
  0x1b   : > { %s659_s10 = sshll.u32 (%p967_p3), %s867_s19, 3  ;;  %s629_s11 = sshll.u32 (%p967_p3), %s163_s9, 6 }
  0x1c   : > { %s168_s23 = scalar_lea.vmem (%p967_p3), %s1105_s1, %s659_s10  ;;  %s165_s27 = scalar_lea.vmem (%p967_p3), [#allocation4], %s629_s11 }
  0x1d   : > { %v211_v0 = vld [vmem:[%s168_s23] sm:$0xff] (%p967_p3)  ;;  %v213_v1 = vld [vmem:[%s168_s23 + $0x10] sm:$0xff] (%p967_p3) }
  0x1e   : > { %v215_v2 = vld [vmem:[%s168_s23 + $0x20] sm:$0xff] (%p967_p3)  ;;  %212 = vst [vmem:[%s165_s27] sm:$0xff] (%p967_p3), %v211_v0  ;;  %214 = vst [vmem:[%s165_s27 + $0x8] sm:$0xff] (%p967_p3), %v213_v1  ;;  %v217_v3 = vld [vmem:[%s168_s23 + $0x30] sm:$0xff] (%p967_p3) }
  0x1f   : > { %216 = vst [vmem:[%s165_s27 + $0x10] sm:$0xff] %v215_v2  ;;  %v219_v4 = vld [vmem:[%s168_s23 + $0x40] sm:$0xff]  ;;  %v221_v5 = vld [vmem:[%s168_s23 + $0x50] sm:$0xff]  ;;  %218 = vst [vmem:[%s165_s27 + $0x18] sm:$0xff] %v217_v3 }
  0x20   : > { %220 = vst [vmem:[%s165_s27 + $0x20] sm:$0xff] %v219_v4  ;;  %222 = vst [vmem:[%s165_s27 + $0x28] sm:$0xff] %v221_v5  ;;  %v223_v6 = vld [vmem:[%s168_s23 + $0x60] sm:$0xff]  ;;  %v225_v7 = vld [vmem:[%s168_s23 + $0x70] sm:$0xff] }
  0x21   : > { %224 = vst [vmem:[%s165_s27 + $0x30] sm:$0xff] %v223_v6  ;;  %226 = vst [vmem:[%s165_s27 + $0x38] sm:$0xff] %v225_v7 }
  0x22 PF: > { %p632_p0 = scmp.ge.s32.totalorder %s875_s21, 1  ;;  %p231_p1 = scmp.lt.s32.totalorder %s875_s21, 5 }
  0x24   : > { %p232_p2 = pnand %p632_p0, %p231_p1 }
  0x25   : > { %s238_s28 = sand.u32 (!%p232_p2), 1, %s851_s15   ;;  %s635_s29 = sshll.u32 (!%p232_p2), %s863_s18, 1 }
  0x26   : > { %235 = sbr.rel (%p232_p2) target bundleno = 736 (0x2e0), region = 62  ;;  %s633_s4 = sshll.u32 (!%p232_p2), %s238_s28, 6 }
  0x27   : > { %p272_p3 = scmp.lt.s32.totalorder (!%p232_p2), %s635_s29, 3  ;;  %s240_s5 = scalar_lea.vmem (!%p232_p2), [#allocation4], %s633_s4 }
  0x28   : > { %s261_s28 = sand.u32 (!%p232_p2), 1, %s843_s13   ;;  %p649_p4 = scmp.ne.s32.totalorder (!%p232_p2), %s859_s17, 0 }
  0x2b   : > { %v877_v8 = vmov 0   ;;  %v754_v9 = vld [vmem:[%s240_s5 + $0x34] ss:$8 sps:$4 sm:$0xff]   ;;  %s1127_s29 = smov (!%p272_p3, %s635_s29), 3  ;;  %v756_v10 = vld [vmem:[%s240_s5 + $0x30] ss:$8 sps:$4 sm:$0xff]  }
  0x2c   : > { %378 = vmatprep.mubr.bf16.mxu0 %v877_v8  ;;  %354 = vmatprep.subr.bf16.mxu0 %v754_v9  ;;  %v757_v11 = vld [vmem:[%s240_s5 + $0x24] ss:$8 sps:$4 sm:$0xff]   ;;  %s636_s9 = sshll.u32 %s1127_s29, 2  ;;  %v759_v12 = vld [vmem:[%s240_s5 + $0x20] ss:$8 sps:$4 sm:$0xff]   ;;  %s638_s10 = sshll.u32 %s1127_s29, 3 }
  0x2d   : > { %355 = vmatpush1.bf16.msra.mxu0 %v756_v10  ;;  %v760_v13 = vld [vmem:[%s240_s5 + $0x14] ss:$8 sps:$4 sm:$0xff]   ;;  %s275_s22 = scalar_lea.vmem %s1104_s0, %s636_s9  ;;  %s1012_s27 = scalar_lea.vmem %s1107_s3, %s638_s10  ;;  %v762_v14 = vld [vmem:[%s240_s5 + $0x10] ss:$8 sps:$4 sm:$0xff]   ;;  %v763_v15 = vld [vmem:[%s240_s5 + $0x4] ss:$8 sps:$4 sm:$0xff]  }
  0x2e   : > { %356 = vmatprep.subr.bf16.mxu0 %v757_v11  ;;  %v765_v16 = vld [vmem:[%s240_s5] ss:$8 sps:$4 sm:$0xff]   ;;  %vm342_vm0 = vcmask 523264   ;;  %s634_s29 = sshll.u32 %s261_s28, 5 }
  0x2f   : > { %v766_v17 = vld [vmem:[%s275_s22] sm:$0xff]   ;;  %s1017_s4 = scalar_lea.vmem [#allocation5], %s634_s29 }
  0x31   : > { %357 = vmatpush1.bf16.msra.mxu0 %v759_v12 }
  0x32   : > { %358 = vmatprep.subr.bf16.mxu0 %v760_v13 }
  0x35   : > { %359 = vmatpush1.bf16.msra.mxu0 %v762_v14 }
  0x36   : > { %360 = vmatprep.subr.bf16.mxu0 %v763_v15 }
  0x39   : > { %361 = vmatpush1.bf16.msra.mxu0 %v765_v16 }
  0x3c   : > { %648 = vmatmul.mubr.msk.bf16.vlgmr.msra.gmra.mxu0 %vm342_vm0, %v766_v17 }
  0xfc   : > { %v380_v18 = vpop.f32.mrf.mxu0 }
  0xfd   : > { %389 = vst [vmem:[%s1017_s4] sm:$0xff] %v380_v18 }
  0xfe   : > { %v382_v19 = vpop.f32.mrf.mxu0 }
  0xff   : > { %390 = vst [vmem:[%s1017_s4 + $0x8] sm:$0xff] %v382_v19  ;;  %396 = sbr.rel (%p649_p4) target bundleno = 263 (0x107), region = 70 }
 0x100   : > { %v384_v20 = vpop.f32.mrf.mxu0 }
 0x101   : > { %391 = vst [vmem:[%s1017_s4 + $0x10] sm:$0xff] %v384_v20 }
 0x102   : > { %v386_v21 = vpop.f32.mrf.mxu0 }
 0x103   : > { %392 = vst [vmem:[%s1017_s4 + $0x18] sm:$0xff] %v386_v21 }
 0x104   : > { %vm397_vm1 = vcmask 7168   ;;  %v878_v22 = vmov -inf   ;;  %v879_v23 = vmov 0  }
 0x105   : > { %398 = vst.msk [vmem:[#allocation2] sm:$0xff] %vm397_vm1, %v878_v22  ;;  %399 = vst.msk [vmem:[#allocation2 + $0x8] sm:$0xff] %vm397_vm1, %v878_v22 }
 0x106   : > { %400 = vst.msk [vmem:[#allocation3] sm:$0xff] %vm397_vm1, %v879_v23  ;;  %401 = vst.msk [vmem:[#allocation3 + $0x8] sm:$0xff] %vm397_vm1, %v879_v23 }
 0x107 PF: > { %v402_v24 = vmax.f32 %v380_v18, %v382_v19  ;;  %v405_v25 = vmax.f32 %v384_v20, %v386_v21  ;;  %v408_v26 = vlaneseq  ;;  %vm463_vm2 = vcmask 7168   ;;  %s650_s5 = sshll.u32 %s859_s17, 8  ;;  %p651_p5 = scmp.ne.s32.totalorder %s859_s17, 1 }
 0x108   : > { %v452_v58 = vstv %s650_s5 }
 0x109   : > { %403 = vmax.xlane.f32.xlu0 %v402_v24  ;;  %v409_v27 = vand.u32 127, %v408_v26 }
 0x10b   : > { %v410_v29 = vadd.s32 128, %v409_v27 }
 0x10c   : > { %v455_v28 = vld [vmem:[#allocation2] sm:$0xff]  ;;  %v456_v32 = vld [vmem:[#allocation2 + $0x8] sm:$0xff] }
 0x10d   : > { %406 = vmax.xlane.f32.xlu0 %v405_v25  ;;  %v459_v60 = vld [vmem:[#allocation3] sm:$0xff]  ;;  %v460_v3 = vld [vmem:[#allocation3 + $0x8] sm:$0xff] }
 0x192   : > { %v404_v30 = vpop.xlane.xlu0 %403 }
 0x193   : > { %vm411_vm3 = vcmp.eq.f32.partialorder %v380_v18, %v404_v30  ;;  %vm412_vm4 = vcmp.eq.f32.partialorder %v382_v19, %v404_v30  ;;  %vm457_vm5 = vcmp.gt.f32.partialorder %v404_v30, %v455_v28  ;;  %v468_v31 = vmax.f32 %v455_v28, %v404_v30 }
 0x194   : > { %v415_v33 = vsel %vm411_vm3, %v409_v27, 256  ;;  %v416_v34 = vsel %vm412_vm4, %v410_v29, 256 }
 0x195   : > { %470 = vst.msk [vmem:[#allocation2] sm:$0xff] %vm463_vm2, %v468_v31  ;;  %vm419_vm6 = vcmp.lt.s32.totalorder %v415_v33, %v416_v34 }
 0x196   : > { %v407_v35 = vpop.xlane.xlu0 %406  ;;  %v420_v36 = vsel %vm419_vm6, %v415_v33, %v416_v34 }
 0x197   : > { %vm413_vm7 = vcmp.eq.f32.partialorder %v384_v20, %v407_v35  ;;  %vm414_vm8 = vcmp.eq.f32.partialorder %v386_v21, %v407_v35  ;;  %v469_v37 = vmax.f32 %v456_v32, %v407_v35  ;;  %v422_v38 = vshra.s32 %v420_v36, 16 }
 0x198   : > { %v417_v39 = vsel %vm413_vm7, %v409_v27, 256  ;;  %v418_v40 = vsel %vm414_vm8, %v410_v29, 256  ;;  %v421_v45 = vand.u32 65535, %v420_v36  ;;  %vm458_vm12 = vcmp.gt.f32.partialorder %v407_v35, %v456_v32 }
 0x199   : > { %471 = vst.msk [vmem:[#allocation2 + $0x8] sm:$0xff] %vm463_vm2, %v469_v37  ;;  %vm435_vm9 = vcmp.lt.s32.totalorder %v417_v39, %v418_v40  ;;  %v424_v41 = vcvt.s32.f32 %v422_v38 }
 0x19a   : > { %v436_v42 = vsel %vm435_vm9, %v417_v39, %v418_v40  ;;  %v423_v47 = vcvt.s32.f32 %v421_v45 }
 0x19b   : > { %v438_v43 = vshra.s32 %v436_v42, 16  ;;  %425 = vmin.xlane.f32.xlu1 %v424_v41  ;;  %v437_v48 = vand.u32 65535, %v436_v42 }
 0x19d   : > { %v440_v44 = vcvt.s32.f32 %v438_v43  ;;  %v439_v51 = vcvt.s32.f32 %v437_v48 }
 0x19f   : > { %441 = vmin.xlane.f32.xlu1 %v440_v44 }
 0x224   : > { %v426_v46 = vpop.xlane.xlu1 %425 }
 0x225   : > { %vm427_vm10 = vcmp.eq.f32.partialorder %v424_v41, %v426_v46  ;;  %v432_v53 = vcvt.f32.s32 %v426_v46 }
 0x226   : > { %v428_v49 = vsel %vm427_vm10, %v423_v47, inf }
 0x227   : > { %429 = vmin.xlane.f32.xlu0 %v428_v49  ;;  %v433_v55 = vshll.u32 %v432_v53, 16 }
 0x228   : > { %v442_v50 = vpop.xlane.xlu1 %441 }
 0x229   : > { %vm443_vm11 = vcmp.eq.f32.partialorder %v440_v44, %v442_v50  ;;  %v448_v56 = vcvt.f32.s32 %v442_v50 }
 0x22a   : > { %v444_v52 = vsel %vm443_vm11, %v439_v51, inf }
 0x22b   : > { %445 = vmin.xlane.f32.xlu1 %v444_v52  ;;  %v449_v62 = vshll.u32 %v448_v56, 16 }
 0x2b0   : > { %v430_v54 = vpop.xlane.xlu0 %429 }
 0x2b1   : > { %v431_v57 = vcvt.f32.s32 %v430_v54 }
 0x2b3   : > { %v434_v59 = vadd.s32 %v433_v55, %v431_v57 }
 0x2b4   : > { %v446_v61 = vpop.xlane.xlu1 %445 }
 0x2b5   : > { %v453_v63 = vadd.s32 %v452_v58, %v434_v59  ;;  %v447_v0 = vcvt.f32.s32 %v446_v61 }
 0x2b7   : > { %v461_v1 = vsel %vm457_vm5, %v453_v63, %v459_v60  ;;  %v450_v2 = vadd.s32 %v449_v62, %v447_v0 }
 0x2b8   : > { %464 = vst.msk [vmem:[#allocation3] sm:$0xff] %vm463_vm2, %v461_v1  ;;  %475 = sbr.rel (%p651_p5) target bundleno = 709 (0x2c5), region = 74 }
 0x2b9   : > { %v454_v4 = vadd.s32 %v452_v58, %v450_v2 }
 0x2bb   : > { %v462_v5 = vsel %vm458_vm12, %v454_v4, %v460_v3 }
 0x2bc   : > { %465 = vst.msk [vmem:[#allocation3 + $0x8] sm:$0xff] %vm463_vm2, %v462_v5 }
 0x2bf   : > { %v476_v6 = vld [vmem:[#allocation3] sm:$0xff] }
 0x2c0   : > { %478 = vst.msk [vmem:[%s1012_s27] sm:$0xff] %vm463_vm2, %v476_v6 }
 0x2c3   : > { %v477_v7 = vld [vmem:[#allocation3 + $0x8] sm:$0xff] }
 0x2c4   : > { %479 = vst.msk [vmem:[%s1012_s27 + $0x8] sm:$0xff] %vm463_vm2, %v477_v7 }
 0x2c5 PF: > { %s654_s9 = sshll.u32 %s859_s17, 1  ;;  %s660_s10 = sshll.u32 %s863_s18, 3 }
 0x2c6   : > { %s502_s15 = sshll.u32 %s1017_s4, 4  ;;  %s499_s11 = sadd.s32 %s660_s10, %s654_s9  ;;  %s1038_s15 = int_to_ptr.vmem [resolvable:$true] %s502_s15 }
 0x2c7   : > { %s656_s22 = sshll.u32 %s499_s11, 7  ;;  %s1047_s29 = scalar_lea.sflag [#allocation6], %s261_s28 }
 0x2c8   : > { %s1043_s27 = scalar_lea.hbm %s1106_s2, %s656_s22  ;;  %s767_s5 = scalar_lea.vmem %s1038_s15, 512 }
 0x2c9   : > { %p768_p6 = scmp.ne.s32.totalorder %s1038_s15, %s767_s5  ;;  %s880_s17 = smov [#allocation5]  }
 0x2ca   : > { %s771_s18 = sshll.u32 %s880_s17, 4  ;;  %s772_s18 = int_to_ptr.vmem [resolvable:$false] %s771_s18 }
 0x2cb   : > { %p769_p7 = pnand %p768_p6, %p983_p10  ;;  %s773_s4 = scalar_lea.vmem %s772_s18, 1024 }
 0x2cc   : > { %p774_p9 = scmp.lt.s32.totalorder %s1038_s15, %s772_s18  ;;  %p775_p11 = scmp.lt.s32.totalorder %s773_s4, %s767_s5 }
 0x2cd   : > { %p770_p8 = pneg %p769_p7 }
 0x2ce   : > { %p776_p13 = por %p775_p11, %p774_p9 }
 0x2d0   : > { %p777_p0 = pnand %p776_p13, %p770_p8 }
 0x2d2   : > { %780 = shalt.err (!%p777_p0)
}
 0x2d3   : > { %s781_s28 = scalar_lea.hbm %s1043_s27, 512  ;;  %s785_s11 = scalar_lea.hbm %s1106_s2, 2048 }
 0x2d4   : > { %p782_p1 = scmp.ne.s32.totalorder %s1043_s27, %s781_s28  ;;  %p786_p4 = scmp.lt.s32.totalorder %s1043_s27, %s1106_s2 }
 0x2d5   : > { %p787_p5 = scmp.lt.s32.totalorder %s785_s11, %s781_s28 }
 0x2d6   : > { %p783_p2 = pnand %p782_p1, %p983_p10 }
 0x2d7   : > { %p788_p6 = por %p787_p5, %p786_p4 }
 0x2d8   : > { %p784_p3 = pneg %p783_p2 }
 0x2da   : > { %p789_p7 = pnand %p788_p6, %p784_p3 }
 0x2dc   : > { %792 = shalt.err (!%p789_p7)
}
 0x2dd   : > { %s881_s23 = smov 256   ;;  %s882_s5 = smov 512  }
 0x2de   : > { %s883_s17 = smov 16  }
 0x2df   : > { %661 = dma.vmem_to_hbm [thread:$0]  (%p983_p10), %s1038_s15, 512, %s1043_s27, %s1047_s29, %s881_s23, %s882_s5, %s883_s17  }
 0x2e0 PF: > { %p667_p8 = scmp.ge.s32.totalorder %s875_s21, 2  ;;  %s521_s18 = sand.u32 1, %s839_s12  }
 0x2e1   : > { %s522_s4 = scalar_lea.sflag [#allocation6], %s521_s18 }
 0x2e2   : > { %p664_p9 = pnand %p667_p8, %p990_p12 }
 0x2e4   : > { %p665_p11 = pneg %p664_p9 }
 0x2e6   : > { %834 = dma.done.wait (%p665_p11), %s522_s4, 512  }
 0x2e7   : > { %836 = vsyncadd (%p665_p11), %s522_s4, 4294966784  ;;  %s17_s21 = sadd.s32 1, %s875_s21   ;;  %s1111_s12 = smov %s843_s13 }
 0x2e8   : > { %p14_p13 = scmp.ge.s32.totalorder %s17_s21, 6   ;;  %s1112_s13 = smov %s847_s14 }
 0x2e9   : > { %s1113_s14 = smov %s988_s7  ;;  %s1114_s15 = smov %s855_s16 }
 0x2ea   : > { %s1115_s16 = smov %s977_s30  ;;  %s1116_s17 = smov %s867_s19 }
 0x2eb   : > { %s1117_s18 = smov %s871_s20  ;;  %s1118_s19 = smov %s1121_s24 }
 0x2ec   : > { %s1119_s20 = smov %s1125_s25  ;;  %16 = sbr.rel (!%p14_p13) target bundleno = 6 (0x6), region = 129 }
 0x2f1   :  { %535 = vsyncpa [#allocation6], 1 }
 0x2f2   :  { %537 = vsyncpa [#allocation6 + $0x1], 1 }

// kernel: reinforce_forward.3
= control target key start
LH: loop header
LB: loop body
LE: loop exit
PB: predicated region body
PF: predicated region fallthrough
CT: control target
= control target key end

     0   :  { %s695_s9 = smov 0   ;;  %s697_s10 = smov 0   ;;  %s797_s0 = inlined_call_operand.vmem [shape: bf16[32,64], index: 0, kind: input, shape index: {}]   ;;  %s798_s1 = inlined_call_operand.vmem [shape: bf16[64,512], index: 1, kind: input, shape index: {}]   ;;  %s799_s2 = inlined_call_operand.vmem [shape: s32[32,1], index: 2, kind: output, shape index: {}]  }
   0x1   :  { %s699_s11 = smov 0   ;;  %s701_s12 = smov 0  }
   0x2   :  { %s703_s13 = smov 0   ;;  %s705_s14 = smov 0  }
   0x3   :  { %s707_s15 = smov 0  }
   0x4 LB: > { %s21_s16 = sadd.s32 1, %s667_s13  ;;  %s24_s17 = sadd.s32 1, %s671_s14  ;;  %s675_s15 = sphi %s707_s15, %s12_s15   ;;  %s671_s14 = sphi %s705_s14, %s805_s14   ;;  %s667_s13 = sphi %s703_s13, %s804_s13   ;;  %s663_s12 = sphi %s701_s12, %s803_s12   ;;  %s659_s11 = sphi %s699_s11, %s802_s11   ;;  %s655_s10 = sphi %s697_s10, %s801_s10   ;;  %s651_s9 = sphi %s695_s9, %s800_s9  }
   0x5   : > { %p22_p0 = scmp.ge.s32.totalorder %s21_s16, 2  ;;  %s57_s18 = sadd.s32 1, %s655_s10 }
   0x6   : > { %p64_p1 = scmp.ne.s32.totalorder %s655_s10, %s651_s9  ;;  %p65_p2 = scmp.eq.s32.totalorder %s675_s15, 0 }
   0x7   : > { %s807_s16 = smov (%p22_p0, %s21_s16), 0  ;;  %s809_s17 = smov (!%p22_p0, %s24_s17), %s671_s14 }
   0x8   : > { %s54_s19 = ssub.s32 %s667_s13, %s807_s16  ;;  %p66_p3 = por %p65_p2, %p64_p1 }
   0x9   : > { %p26_p4 = scmp.ge.s32.totalorder %s809_s17, 2  ;;  %p55_p5 = scmp.eq.s32.totalorder %s54_s19, 0 }
   0xa   : > { %p523_p6 = scmp.ge.s32.totalorder %s675_s15, 4 }
   0xb   : > { %s811_s17 = smov (%p26_p4, %s809_s17), 0 }
   0xc   : > { %s744_s20 = scalar_select %p55_p5, %s655_s10, %s57_s18  }
   0xd   : > { %116 = sbr.rel (%p523_p6) target bundleno = 26 (0x1a), region = 16 }
  0x12   : > { %128 = sbr.rel (!%p66_p3) target bundleno = 26 (0x1a), region = 24  ;;  %s130_s21 = sand.u32 (%p66_p3), 1, %s655_s10  }
  0x13   : > { %s548_s22 = sshll.u32 (%p66_p3), %s667_s13, 3  ;;  %s524_s23 = sshll.u32 (%p66_p3), %s130_s21, 6 }
  0x14   : > { %s135_s26 = scalar_lea.vmem (%p66_p3), %s798_s1, %s548_s22  ;;  %s132_s27 = scalar_lea.vmem (%p66_p3), [#allocation4], %s524_s23 }
  0x15   : > { %v178_v0 = vld [vmem:[%s135_s26] sm:$0xff] (%p66_p3)  ;;  %v180_v1 = vld [vmem:[%s135_s26 + $0x10] sm:$0xff] (%p66_p3) }
  0x16   : > { %v182_v2 = vld [vmem:[%s135_s26 + $0x20] sm:$0xff] (%p66_p3)  ;;  %179 = vst [vmem:[%s132_s27] sm:$0xff] (%p66_p3), %v178_v0  ;;  %181 = vst [vmem:[%s132_s27 + $0x8] sm:$0xff] (%p66_p3), %v180_v1  ;;  %v184_v3 = vld [vmem:[%s135_s26 + $0x30] sm:$0xff] (%p66_p3) }
  0x17   : > { %183 = vst [vmem:[%s132_s27 + $0x10] sm:$0xff] %v182_v2  ;;  %v186_v4 = vld [vmem:[%s135_s26 + $0x40] sm:$0xff]  ;;  %v188_v5 = vld [vmem:[%s135_s26 + $0x50] sm:$0xff]  ;;  %185 = vst [vmem:[%s132_s27 + $0x18] sm:$0xff] %v184_v3 }
  0x18   : > { %187 = vst [vmem:[%s132_s27 + $0x20] sm:$0xff] %v186_v4  ;;  %189 = vst [vmem:[%s132_s27 + $0x28] sm:$0xff] %v188_v5  ;;  %v190_v6 = vld [vmem:[%s135_s26 + $0x60] sm:$0xff]  ;;  %v192_v7 = vld [vmem:[%s135_s26 + $0x70] sm:$0xff] }
  0x19   : > { %191 = vst [vmem:[%s132_s27 + $0x30] sm:$0xff] %v190_v6  ;;  %193 = vst [vmem:[%s132_s27 + $0x38] sm:$0xff] %v192_v7 }
  0x1a PF: > { %p527_p7 = scmp.ge.s32.totalorder %s675_s15, 1  ;;  %p198_p8 = scmp.lt.s32.totalorder %s675_s15, 5 }
  0x1c   : > { %p199_p9 = pnand %p527_p7, %p198_p8 }
  0x1d   : > { %s205_s28 = sand.u32 (!%p199_p9), 1, %s651_s9   ;;  %s529_s29 = sshll.u32 (!%p199_p9), %s663_s12, 1 }
  0x1e   : > { %202 = sbr.rel (%p199_p9) target bundleno = 700 (0x2bc), region = 62  ;;  %s528_s30 = sshll.u32 (!%p199_p9), %s205_s28, 6 }
  0x1f   : > { %p232_p10 = scmp.lt.s32.totalorder (!%p199_p9), %s529_s29, 3  ;;  %s207_s3 = scalar_lea.vmem (!%p199_p9), [#allocation4], %s528_s30 }
  0x20   : > { %p543_p11 = scmp.ne.s32.totalorder (!%p199_p9), %s659_s11, 0 }
  0x23   : > { %v677_v8 = vmov 0   ;;  %v608_v9 = vld [vmem:[%s207_s3 + $0x34] ss:$8 sps:$4 sm:$0xff]   ;;  %s813_s29 = smov (!%p232_p10, %s529_s29), 3  ;;  %v610_v10 = vld [vmem:[%s207_s3 + $0x30] ss:$8 sps:$4 sm:$0xff]  }
  0x24   : > { %336 = vmatprep.mubr.bf16.mxu0 %v677_v8  ;;  %312 = vmatprep.subr.bf16.mxu0 %v608_v9  ;;  %v611_v11 = vld [vmem:[%s207_s3 + $0x24] ss:$8 sps:$4 sm:$0xff]   ;;  %s530_s4 = sshll.u32 %s813_s29, 2  ;;  %v613_v12 = vld [vmem:[%s207_s3 + $0x20] ss:$8 sps:$4 sm:$0xff]   ;;  %s532_s5 = sshll.u32 %s813_s29, 3 }
  0x25   : > { %313 = vmatpush1.bf16.msra.mxu0 %v610_v10  ;;  %v614_v13 = vld [vmem:[%s207_s3 + $0x14] ss:$8 sps:$4 sm:$0xff]   ;;  %s235_s8 = scalar_lea.vmem %s797_s0, %s530_s4  ;;  %s762_s18 = scalar_lea.vmem %s799_s2, %s532_s5  ;;  %v616_v14 = vld [vmem:[%s207_s3 + $0x10] ss:$8 sps:$4 sm:$0xff]   ;;  %v617_v15 = vld [vmem:[%s207_s3 + $0x4] ss:$8 sps:$4 sm:$0xff]  }
  0x26   : > { %314 = vmatprep.subr.bf16.mxu0 %v611_v11  ;;  %v619_v16 = vld [vmem:[%s207_s3] ss:$8 sps:$4 sm:$0xff]   ;;  %vm300_vm0 = vcmask 523264  }
  0x27   : > { %v620_v17 = vld [vmem:[%s235_s8] sm:$0xff]  }
  0x29   : > { %315 = vmatpush1.bf16.msra.mxu0 %v613_v12 }
  0x2a   : > { %316 = vmatprep.subr.bf16.mxu0 %v614_v13 }
  0x2d   : > { %317 = vmatpush1.bf16.msra.mxu0 %v616_v14 }
  0x2e   : > { %318 = vmatprep.subr.bf16.mxu0 %v617_v15 }
  0x31   : > { %319 = vmatpush1.bf16.msra.mxu0 %v619_v16 }
  0x34   : > { %542 = vmatmul.mubr.msk.bf16.vlgmr.msra.gmra.mxu0 %vm300_vm0, %v620_v17 }
  0xf4   : > { %v338_v18 = vpop.f32.mrf.mxu0 }
  0xf6   : > { %v340_v19 = vpop.f32.mrf.mxu0  ;;  %350 = sbr.rel (%p543_p11) target bundleno = 254 (0xfe), region = 70 }
  0xf8   : > { %v342_v20 = vpop.f32.mrf.mxu0 }
  0xfa   : > { %v344_v21 = vpop.f32.mrf.mxu0 }
  0xfb   : > { %vm351_vm1 = vcmask 7168   ;;  %v678_v22 = vmov -inf   ;;  %v679_v23 = vmov 0  }
  0xfc   : > { %352 = vst.msk [vmem:[#allocation2] sm:$0xff] %vm351_vm1, %v678_v22  ;;  %353 = vst.msk [vmem:[#allocation2 + $0x8] sm:$0xff] %vm351_vm1, %v678_v22 }
  0xfd   : > { %354 = vst.msk [vmem:[#allocation3] sm:$0xff] %vm351_vm1, %v679_v23  ;;  %355 = vst.msk [vmem:[#allocation3 + $0x8] sm:$0xff] %vm351_vm1, %v679_v23 }
  0xfe PF: > { %v356_v24 = vmax.f32 %v338_v18, %v340_v19  ;;  %v359_v25 = vmax.f32 %v342_v20, %v344_v21  ;;  %v362_v26 = vlaneseq  ;;  %vm417_vm2 = vcmask 7168   ;;  %s544_s19 = sshll.u32 %s659_s11, 8  ;;  %p545_p12 = scmp.ne.s32.totalorder %s659_s11, 1 }
  0xff   : > { %v406_v58 = vstv %s544_s19 }
 0x100   : > { %357 = vmax.xlane.f32.xlu0 %v356_v24  ;;  %v363_v27 = vand.u32 127, %v362_v26 }
 0x102   : > { %v364_v29 = vadd.s32 128, %v363_v27 }
 0x103   : > { %v409_v28 = vld [vmem:[#allocation2] sm:$0xff]  ;;  %v410_v32 = vld [vmem:[#allocation2 + $0x8] sm:$0xff] }
 0x104   : > { %360 = vmax.xlane.f32.xlu0 %v359_v25  ;;  %v413_v60 = vld [vmem:[#allocation3] sm:$0xff]  ;;  %v414_v3 = vld [vmem:[#allocation3 + $0x8] sm:$0xff] }
 0x189   : > { %v358_v30 = vpop.xlane.xlu0 %357 }
 0x18a   : > { %vm365_vm3 = vcmp.eq.f32.partialorder %v338_v18, %v358_v30  ;;  %vm366_vm4 = vcmp.eq.f32.partialorder %v340_v19, %v358_v30  ;;  %vm411_vm5 = vcmp.gt.f32.partialorder %v358_v30, %v409_v28  ;;  %v422_v31 = vmax.f32 %v409_v28, %v358_v30 }
 0x18b   : > { %v369_v33 = vsel %vm365_vm3, %v363_v27, 256  ;;  %v370_v34 = vsel %vm366_vm4, %v364_v29, 256 }
 0x18c   : > { %424 = vst.msk [vmem:[#allocation2] sm:$0xff] %vm417_vm2, %v422_v31  ;;  %vm373_vm6 = vcmp.lt.s32.totalorder %v369_v33, %v370_v34 }
 0x18d   : > { %v361_v35 = vpop.xlane.xlu0 %360  ;;  %v374_v36 = vsel %vm373_vm6, %v369_v33, %v370_v34 }
 0x18e   : > { %vm367_vm7 = vcmp.eq.f32.partialorder %v342_v20, %v361_v35  ;;  %vm368_vm8 = vcmp.eq.f32.partialorder %v344_v21, %v361_v35  ;;  %v423_v37 = vmax.f32 %v410_v32, %v361_v35  ;;  %v376_v38 = vshra.s32 %v374_v36, 16 }
 0x18f   : > { %v371_v39 = vsel %vm367_vm7, %v363_v27, 256  ;;  %v372_v40 = vsel %vm368_vm8, %v364_v29, 256  ;;  %v375_v45 = vand.u32 65535, %v374_v36  ;;  %vm412_vm12 = vcmp.gt.f32.partialorder %v361_v35, %v410_v32 }
 0x190   : > { %425 = vst.msk [vmem:[#allocation2 + $0x8] sm:$0xff] %vm417_vm2, %v423_v37  ;;  %vm389_vm9 = vcmp.lt.s32.totalorder %v371_v39, %v372_v40  ;;  %v378_v41 = vcvt.s32.f32 %v376_v38 }
 0x191   : > { %v390_v42 = vsel %vm389_vm9, %v371_v39, %v372_v40  ;;  %v377_v47 = vcvt.s32.f32 %v375_v45 }
 0x192   : > { %v392_v43 = vshra.s32 %v390_v42, 16  ;;  %379 = vmin.xlane.f32.xlu1 %v378_v41  ;;  %v391_v48 = vand.u32 65535, %v390_v42 }
 0x194   : > { %v394_v44 = vcvt.s32.f32 %v392_v43  ;;  %v393_v51 = vcvt.s32.f32 %v391_v48 }
 0x196   : > { %395 = vmin.xlane.f32.xlu1 %v394_v44 }
 0x21b   : > { %v380_v46 = vpop.xlane.xlu1 %379 }
 0x21c   : > { %vm381_vm10 = vcmp.eq.f32.partialorder %v378_v41, %v380_v46  ;;  %v386_v53 = vcvt.f32.s32 %v380_v46 }
 0x21d   : > { %v382_v49 = vsel %vm381_vm10, %v377_v47, inf }
 0x21e   : > { %383 = vmin.xlane.f32.xlu0 %v382_v49  ;;  %v387_v55 = vshll.u32 %v386_v53, 16 }
 0x21f   : > { %v396_v50 = vpop.xlane.xlu1 %395 }
 0x220   : > { %vm397_vm11 = vcmp.eq.f32.partialorder %v394_v44, %v396_v50  ;;  %v402_v56 = vcvt.f32.s32 %v396_v50 }
 0x221   : > { %v398_v52 = vsel %vm397_vm11, %v393_v51, inf }
 0x222   : > { %399 = vmin.xlane.f32.xlu1 %v398_v52  ;;  %v403_v62 = vshll.u32 %v402_v56, 16 }
 0x2a7   : > { %v384_v54 = vpop.xlane.xlu0 %383 }
 0x2a8   : > { %v385_v57 = vcvt.f32.s32 %v384_v54 }
 0x2aa   : > { %v388_v59 = vadd.s32 %v387_v55, %v385_v57 }
 0x2ab   : > { %v400_v61 = vpop.xlane.xlu1 %399 }
 0x2ac   : > { %v407_v63 = vadd.s32 %v406_v58, %v388_v59  ;;  %v401_v0 = vcvt.f32.s32 %v400_v61 }
 0x2ae   : > { %v415_v1 = vsel %vm411_vm5, %v407_v63, %v413_v60  ;;  %v404_v2 = vadd.s32 %v403_v62, %v401_v0 }
 0x2af   : > { %418 = vst.msk [vmem:[#allocation3] sm:$0xff] %vm417_vm2, %v415_v1  ;;  %429 = sbr.rel (%p545_p12) target bundleno = 700 (0x2bc), region = 74 }
 0x2b0   : > { %v408_v4 = vadd.s32 %v406_v58, %v404_v2 }
 0x2b2   : > { %v416_v5 = vsel %vm412_vm12, %v408_v4, %v414_v3 }
 0x2b3   : > { %419 = vst.msk [vmem:[#allocation3 + $0x8] sm:$0xff] %vm417_vm2, %v416_v5 }
 0x2b6   : > { %v430_v6 = vld [vmem:[#allocation3] sm:$0xff] }
 0x2b7   : > { %432 = vst.msk [vmem:[%s762_s18] sm:$0xff] %vm417_vm2, %v430_v6 }
 0x2ba   : > { %v431_v7 = vld [vmem:[#allocation3 + $0x8] sm:$0xff] }
 0x2bb   : > { %433 = vst.msk [vmem:[%s762_s18 + $0x8] sm:$0xff] %vm417_vm2, %v431_v7 }
 0x2bc PF: > { %s12_s15 = sadd.s32 1, %s675_s15   ;;  %s800_s9 = smov %s655_s10 }
 0x2bd   : > { %p9_p13 = scmp.ge.s32.totalorder %s12_s15, 6   ;;  %s801_s10 = smov %s744_s20 }
 0x2be   : > { %s802_s11 = smov %s667_s13  ;;  %s803_s12 = smov %s671_s14 }
 0x2bf   : > { %s804_s13 = smov %s807_s16  ;;  %s805_s14 = smov %s811_s17 }
 0x2c0   :  { %11 = sbr.rel (!%p9_p13) target bundleno = 4 (0x4), region = 112 }

</bundles_post_ra>
